<compile_context>
chip_gen: v5e
topology: v5e:2x2
jax: 0.10.0
libtpu: 0.0.40
codegen_flags: <defaults>
</compile_context>

<pallas_src>
import functools

import jax
import jax.numpy as jnp
from jax.experimental import pallas as pl
from jax.experimental.pallas import tpu as pltpu

_SUBLANES = 8
_LANES = 128


# ---------------------------------------------------------------------------
# Kernel 1 (one-shot, tiny): gamma/beta = LeakyReLU(Linear(embedding))
# ---------------------------------------------------------------------------
def _film_params_kernel(emb_ref, wg_ref, bg_ref, wb_ref, bb_ref,
                        gout_ref, bout_ref, *, slope):
    # emb: (N, E); wg/wb: (C, E); bg/bb: (1, C); outputs: (N, C).
    emb = emb_ref[...]
    # Per-(n, c) dot product as VPU multiply + XLU lane reduce (off the MXU:
    # E and C are tiny, an MXU tile would be mostly padding).
    g = jnp.sum(emb[:, None, :] * wg_ref[...][None, :, :], axis=-1) + bg_ref[...]
    b = jnp.sum(emb[:, None, :] * wb_ref[...][None, :, :], axis=-1) + bb_ref[...]
    # LeakyReLU(0.01) on the modulation parameters (as in the PyTorch module).
    gout_ref[...] = jnp.where(g >= 0.0, g, slope * g)
    bout_ref[...] = jnp.where(b >= 0.0, b, slope * b)


# ---------------------------------------------------------------------------
# Kernel 2 (streaming, HBM-bound): out = x * gamma + beta, per (n, c) row
# ---------------------------------------------------------------------------
def _film_modulate_kernel(x_ref, g_ref, b_ref, out_ref):
    # x: (tile_r, tile_hw); g/b: (tile_r, 1) broadcast along the lane axis.
    out_ref[...] = x_ref[...] * g_ref[...] + b_ref[...]


# ---------------------------------------------------------------------------
# Wrapper: NCHW in / NCHW out, PyTorch nn.Linear parameter layout
# ---------------------------------------------------------------------------
def film_forward(x_nchw, embedding, wg, bg, wb, bb, *, negative_slope=0.01):
    """FiLM forward.

    x_nchw:    (N, C, H, W)
    embedding: (N, E)
    wg, wb:    (C, E)  PyTorch nn.Linear weight layout (out_features, in_features)
    bg, bb:    (C,)    biases
    """
    N, C, H, W = x_nchw.shape
    HW = H * W
    R = N * C

    # ---- Stage 1: gamma/beta (tiny one-shot kernel, all operands in VMEM) ----
    params_kernel = functools.partial(_film_params_kernel, slope=negative_slope)
    g_nc, b_nc = pl.pallas_call(
        params_kernel,
        out_shape=(jax.ShapeDtypeStruct((N, C), jnp.float32),
                   jax.ShapeDtypeStruct((N, C), jnp.float32)),
    )(embedding.astype(jnp.float32),
      wg.astype(jnp.float32), bg.reshape(1, C).astype(jnp.float32),
      wb.astype(jnp.float32), bb.reshape(1, C).astype(jnp.float32))

    # Per-(n, c) row vectors for the streaming pass (layout plumbing only).
    g_flat = g_nc.reshape(R, 1).astype(x_nchw.dtype)
    b_flat = b_nc.reshape(R, 1).astype(x_nchw.dtype)

    # ---- Stage 2: streaming modulation ---------------------------------------
    # Lane-dense slab: rows = (n, c) pairs, lanes = H*W.
    x2 = x_nchw.reshape(R, HW)

    # Fixed lane-dense bands; cdiv + masked remainder instead of divisor hunting.
    if HW % _LANES == 0:
        tile_hw = min(HW, 512)
    else:
        tile_hw = HW  # full-extent last dim is always a legal block

    # Row tile: multiple of 8, sized so one x block is ~2 MiB.
    bytes_per_elt = x2.dtype.itemsize
    target_block_bytes = 2 * 1024 * 1024
    budget_rows = max(_SUBLANES, target_block_bytes // (tile_hw * bytes_per_elt))
    budget_rows = max(_SUBLANES, (budget_rows // _SUBLANES) * _SUBLANES)
    tile_r = R if R <= budget_rows else budget_rows

    grid = (pl.cdiv(R, tile_r), pl.cdiv(HW, tile_hw))

    out2 = pl.pallas_call(
        _film_modulate_kernel,
        out_shape=jax.ShapeDtypeStruct((R, HW), x2.dtype),
        grid_spec=pltpu.PrefetchScalarGridSpec(
            num_scalar_prefetch=0,
            grid=grid,
            in_specs=[
                pl.BlockSpec((tile_r, tile_hw), lambda i, j: (i, j)),
                pl.BlockSpec((tile_r, 1), lambda i, j: (i, 0)),
                pl.BlockSpec((tile_r, 1), lambda i, j: (i, 0)),
            ],
            out_specs=pl.BlockSpec((tile_r, tile_hw), lambda i, j: (i, j)),
        ),
        compiler_params=pltpu.CompilerParams(
            dimension_semantics=("parallel", "parallel"),
            vmem_limit_bytes=32 * 1024 * 1024,
        ),
    )(x2, g_flat, b_flat)

    return out2.reshape(N, C, H, W)


# ---------------------------------------------------------------------------
# Pure-JAX reference (correctness check only)
# ---------------------------------------------------------------------------
def _ref_film(x, emb, wg, bg, wb, bb, slope=0.01):
    g = emb @ wg.T + bg
    b = emb @ wb.T + bb
    g = jnp.where(g >= 0, g, slope * g)
    b = jnp.where(b >= 0, b, slope * b)
    return x * g[:, :, None, None] + b[:, :, None, None]


if __name__ == "__main__":
    N, C, H, W, E = 2, 4, 16, 16, 32

    key = jax.random.PRNGKey(0)
    ks = jax.random.split(key, 6)

    x = jax.random.normal(ks[0], (N, C, H, W), jnp.float32)
    embedding = jax.random.normal(ks[1], (N, E), jnp.float32)

    bound = (6.0 / E) ** 0.5  # kaiming-uniform-ish scale for the Linear weights
    wg = jax.random.uniform(ks[2], (C, E), jnp.float32, -bound, bound)
    wb = jax.random.uniform(ks[3], (C, E), jnp.float32, -bound, bound)
    # PyTorch inits these biases to zero; use small nonzero values to exercise
    # the full code path in the numerical check.
    bg = 0.05 * jax.random.normal(ks[4], (C,), jnp.float32)
    bb = 0.05 * jax.random.normal(ks[5], (C,), jnp.float32)

    out = film_forward(x, embedding, wg, bg, wb, bb)
    jax.block_until_ready(out)

    ref = _ref_film(x, embedding, wg, bg, wb, bb)
    assert out.shape == (N, C, H, W)
    assert jnp.allclose(out, ref, atol=1e-5, rtol=1e-5), (
        float(jnp.max(jnp.abs(out - ref))))

    print("KERNEL_OK")
</pallas_src>

<mosaic_0001>
module attributes {stable_mosaic.version = 11 : i64} {
  func.func @_film_params_kernel(%arg0: memref<2x32xf32, #tpu.memory_space<vmem>>, %arg1: memref<4x32xf32, #tpu.memory_space<vmem>>, %arg2: memref<1x4xf32, #tpu.memory_space<vmem>>, %arg3: memref<4x32xf32, #tpu.memory_space<vmem>>, %arg4: memref<1x4xf32, #tpu.memory_space<vmem>>, %arg5: memref<2x4xf32, #tpu.memory_space<vmem>>, %arg6: memref<2x4xf32, #tpu.memory_space<vmem>>) attributes {dimension_semantics = [], scalar_prefetch = 0 : i64, scratch_operands = 0 : i64, tpu.core_type = #tpu.core_type<tc>} {
    %c0 = arith.constant 0 : index
    %c0_0 = arith.constant 0 : index
    %0 = vector.load %arg0[%c0, %c0_0] : memref<2x32xf32, #tpu.memory_space<vmem>>, vector<2x32xf32>
    %1 = vector.shape_cast %0 : vector<2x32xf32> to vector<2x1x32xf32>
    %c0_1 = arith.constant 0 : index
    %c0_2 = arith.constant 0 : index
    %2 = vector.load %arg1[%c0_1, %c0_2] : memref<4x32xf32, #tpu.memory_space<vmem>>, vector<4x32xf32>
    %3 = vector.shape_cast %2 : vector<4x32xf32> to vector<1x4x32xf32>
    %4 = vector.broadcast %1 : vector<2x1x32xf32> to vector<2x4x32xf32>
    %5 = vector.broadcast %3 : vector<1x4x32xf32> to vector<2x4x32xf32>
    %6 = arith.mulf %4, %5 : vector<2x4x32xf32>
    %cst = arith.constant dense<0.000000e+00> : vector<2x4xf32>
    %7 = vector.multi_reduction <add>, %6, %cst [2] : vector<2x4x32xf32> to vector<2x4xf32>
    %c0_3 = arith.constant 0 : index
    %c0_4 = arith.constant 0 : index
    %8 = vector.load %arg2[%c0_3, %c0_4] : memref<1x4xf32, #tpu.memory_space<vmem>>, vector<1x4xf32>
    %9 = vector.broadcast %8 : vector<1x4xf32> to vector<2x4xf32>
    %10 = arith.addf %7, %9 : vector<2x4xf32>
    %11 = vector.shape_cast %0 : vector<2x32xf32> to vector<2x1x32xf32>
    %c0_5 = arith.constant 0 : index
    %c0_6 = arith.constant 0 : index
    %12 = vector.load %arg3[%c0_5, %c0_6] : memref<4x32xf32, #tpu.memory_space<vmem>>, vector<4x32xf32>
    %13 = vector.shape_cast %12 : vector<4x32xf32> to vector<1x4x32xf32>
    %14 = vector.broadcast %11 : vector<2x1x32xf32> to vector<2x4x32xf32>
    %15 = vector.broadcast %13 : vector<1x4x32xf32> to vector<2x4x32xf32>
    %16 = arith.mulf %14, %15 : vector<2x4x32xf32>
    %cst_7 = arith.constant dense<0.000000e+00> : vector<2x4xf32>
    %17 = vector.multi_reduction <add>, %16, %cst_7 [2] : vector<2x4x32xf32> to vector<2x4xf32>
    %c0_8 = arith.constant 0 : index
    %c0_9 = arith.constant 0 : index
    %18 = vector.load %arg4[%c0_8, %c0_9] : memref<1x4xf32, #tpu.memory_space<vmem>>, vector<1x4xf32>
    %19 = vector.broadcast %18 : vector<1x4xf32> to vector<2x4xf32>
    %20 = arith.addf %17, %19 : vector<2x4xf32>
    %cst_10 = arith.constant 0.000000e+00 : f32
    %21 = vector.broadcast %cst_10 : f32 to vector<2x4xf32>
    %22 = arith.cmpf oge, %10, %21 : vector<2x4xf32>
    %cst_11 = arith.constant 0.00999999977 : f32
    %23 = vector.broadcast %cst_11 : f32 to vector<2x4xf32>
    %24 = arith.mulf %23, %10 : vector<2x4xf32>
    %25 = arith.select %22, %10, %24 : vector<2x4xi1>, vector<2x4xf32>
    %c0_12 = arith.constant 0 : index
    %c0_13 = arith.constant 0 : index
    %26 = vector.load %arg5[%c0_12, %c0_13] : memref<2x4xf32, #tpu.memory_space<vmem>>, vector<2x4xf32>
    tpu.vector_store %arg5[%c0_12, %c0_13], %25 {strides = array<i32>} : memref<2x4xf32, #tpu.memory_space<vmem>>, vector<2x4xf32>,
    %cst_14 = arith.constant 0.000000e+00 : f32
    %27 = vector.broadcast %cst_14 : f32 to vector<2x4xf32>
    %28 = arith.cmpf oge, %20, %27 : vector<2x4xf32>
    %cst_15 = arith.constant 0.00999999977 : f32
    %29 = vector.broadcast %cst_15 : f32 to vector<2x4xf32>
    %30 = arith.mulf %29, %20 : vector<2x4xf32>
    %31 = arith.select %28, %20, %30 : vector<2x4xi1>, vector<2x4xf32>
    %c0_16 = arith.constant 0 : index
    %c0_17 = arith.constant 0 : index
    %32 = vector.load %arg6[%c0_16, %c0_17] : memref<2x4xf32, #tpu.memory_space<vmem>>, vector<2x4xf32>
    tpu.vector_store %arg6[%c0_16, %c0_17], %31 {strides = array<i32>} : memref<2x4xf32, #tpu.memory_space<vmem>>, vector<2x4xf32>,
    return
  }
}

</mosaic_0001>

<bundles_post_ra>
// kernel: tpu_custom_call.1
= control target key start
LH: loop header
LB: loop body
LE: loop exit
PB: predicated region body
PF: predicated region fallthrough
CT: control target
= control target key end

     0   :  { %12 = vsyncpa [#allocation3], 0  ;;  %s397_s0 = inlined_call_operand.hbm [shape: f32[2,32], index: 0, kind: input, shape index: {}]   ;;  %s398_s1 = inlined_call_operand.hbm [shape: f32[4,32], index: 1, kind: input, shape index: {}]   ;;  %s399_s2 = inlined_call_operand.vmem [shape: f32[1,4], index: 2, kind: input, shape index: {}]   ;;  %s400_s3 = inlined_call_operand.hbm [shape: f32[4,32], index: 3, kind: input, shape index: {}]   ;;  %s401_s4 = inlined_call_operand.vmem [shape: f32[1,4], index: 4, kind: input, shape index: {}]   ;;  %s402_s5 = inlined_call_operand.hbm [shape: f32[2,4], index: 5, kind: output, shape index: {0}]   ;;  %s403_s6 = inlined_call_operand.hbm [shape: f32[2,4], index: 6, kind: output, shape index: {1}]  }
   0x1   :  { %13 = vsyncpa [#allocation6], 0 }
   0x2   :  { %14 = vsyncpa [#allocation4], 0  ;;  %s32_s23 = sshll.u32 %s398_s1, 4  ;;  %s33_s23 = int_to_ptr.hbm [resolvable:$true] %s32_s23 }
   0x3   :  { %15 = vsyncpa [#allocation10], 0  ;;  %s331_s24 = smov [#allocation5]   ;;  %s21_s28 = sshll.u32 %s397_s0, 4  ;;  %s22_s28 = int_to_ptr.hbm [resolvable:$true] %s21_s28 }
   0x4   :  { %s34_s25 = sshll.u32 %s331_s24, 4  ;;  %s332_s29 = smov [#allocation2]   ;;  %s35_s25 = int_to_ptr.vmem [resolvable:$true] %s34_s25 }
   0x5   :  { %37 = dma.hbm_to_vmem [thread:$0]  %s33_s23, 64, %s35_s25, [#allocation6]  }
   0x6   :  { %s23_s30 = sshll.u32 %s332_s29, 4  ;;  %s45_s9 = sshll.u32 %s400_s3, 4  ;;  %s24_s30 = int_to_ptr.vmem [resolvable:$true] %s23_s30  ;;  %s46_s9 = int_to_ptr.hbm [resolvable:$true] %s45_s9 }
   0x7   :  { %26 = dma.hbm_to_vmem [thread:$0]  %s22_s28, 32, %s24_s30, [#allocation3]  }
   0x8   :  { %s333_s1 = smov [#allocation7]  }
   0x9   :  { %s47_s10 = sshll.u32 %s333_s1, 4  ;;  %s48_s10 = int_to_ptr.vmem [resolvable:$true] %s47_s10 }
   0xa   :  { %50 = dma.hbm_to_vmem [thread:$0]  %s46_s9, 64, %s48_s10, [#allocation6]  }
   0xb   :  { %323 = dma.done.wait [#allocation3], 32  }
   0xc   :  { %324 = vsyncadd [#allocation3], 4294967264 }
   0xd   :  { %325 = dma.done.wait [#allocation6], 128  }
   0xe   :  { %326 = vsyncadd [#allocation6], 4294967168  ;;  %v85_v0 = vlaneseq  ;;  %v65_v2 = vld [vmem:[#allocation2] sm:$0x3]  ;;  %v94_v3 = vld [vmem:[#allocation7] sm:$0xf] }
   0xf   :  { %v68_v4 = vld [vmem:[#allocation5] sm:$0xf]  ;;  %v69_v5 = vperm.slane %v65_v2, 0  ;;  %v67_v6 = vrot.slane %v65_v2, 1  ;;  %v201_v7 = vld [vmem:[%s399_s2] ss:$0 sm:$0xff] }
  0x10   :  { %v86_v1 = vshrl.u32 %v85_v0, 7  ;;  %vm75_vm0 = vcmask 257024   ;;  %v202_v15 = vld [vmem:[%s401_s4] ss:$0 sm:$0xff]  ;;  %v334_v18 = vmov 0   ;;  %v130_v38 = vand.u32 127, %v85_v0 }
  0x11   :  { %v95_v8 = vmul.f32 %v94_v3, %v69_v5  ;;  %v73_v9 = vmul.f32 %v69_v5, %v68_v4  ;;  %v70_v10 = vperm.slane %v67_v6, 0  ;;  %198 = vset.pattern.permute.xlu0 %v334_v18  ;;  %199 = vset.pattern.permute.xlu1 %v334_v18  ;;  %s335_s2 = smov [#allocation9]   ;;  %s175_s15 = sshll.u32 %s403_s6, 4  ;;  %vm133_vm5 = vcmask 1041409   ;;  %s176_s15 = int_to_ptr.hbm [resolvable:$true] %s175_s15 }
  0x12   :  { %197 = vset.pattern.permute.xlu2 %v86_v1  ;;  %s173_s4 = sshll.u32 %s335_s2, 4  ;;  %vm136_vm6 = vcmask 25600   ;;  %s336_s16 = smov [#allocation8]   ;;  %s174_s4 = int_to_ptr.vmem [resolvable:$true] %s173_s4 }
  0x13   :  { %v97_v11 = vsel %vm75_vm0, %v95_v8, 0.0  ;;  %v76_v12 = vsel %vm75_vm0, %v73_v9, 0.0  ;;  %v96_v13 = vmul.f32 %v94_v3, %v70_v10  ;;  %v74_v14 = vmul.f32 %v70_v10, %v68_v4  ;;  %s162_s17 = sshll.u32 %s336_s16, 4  ;;  %s164_s20 = sshll.u32 %s402_s5, 4  ;;  %s163_s17 = int_to_ptr.vmem [resolvable:$true] %s162_s17  ;;  %s165_s20 = int_to_ptr.hbm [resolvable:$true] %s164_s20 }
  0x14   :  { %98 = vadd.xlane.f32.xlu1 %v97_v11  ;;  %77 = vadd.xlane.f32.xlu0 %v76_v12 }
  0x15   :  { %v100_v16 = vsel %vm75_vm0, %v96_v13, 0.0  ;;  %v79_v17 = vsel %vm75_vm0, %v74_v14, 0.0 }
  0x1a   :  { %89 = vperm.xlu2 %197, %v201_v7  }
  0x1c   :  { %101 = vadd.xlane.f32.xlu1 %v100_v16  ;;  %80 = vadd.xlane.f32.xlu0 %v79_v17 }
  0x22   :  { %110 = vperm.xlu2 %197, %v202_v15  }
  0x2a   :  { %200 = vset.pattern.permute.xlu2 %v334_v18 }
  0x74   :  { %v90_v19 = vpop.permute.xlu2 %89 }
  0x7c   :  { %v111_v20 = vpop.permute.xlu2 %110 }
  0x87   :  { %v99_v21 = vpop.xlane.xlu1 %98  ;;  %v78_v22 = vpop.xlane.xlu0 %77 }
  0x88   :  { %v113_v23 = vadd.f32 %v111_v20, %v99_v21  ;;  %v92_v24 = vadd.f32 %v90_v19, %v78_v22 }
  0x8a   :  { %v140_v25 = vmul.f32 0.01, %v113_v23  ;;  %v117_v26 = vmul.f32 0.01, %v92_v24  ;;  %vm138_vm1 = vcmp.ge.f32.partialorder %v113_v23, 0.0  ;;  %vm115_vm2 = vcmp.ge.f32.partialorder %v92_v24, 0.0 }
  0x8c   :  { %v142_v27 = vsel %vm138_vm1, %v113_v23, %v140_v25  ;;  %v119_v28 = vsel %vm115_vm2, %v92_v24, %v117_v26 }
  0x8d   :  { %147 = vperm.xlu2 %200, %v142_v27   ;;  %124 = vperm.xlu0 %198, %v119_v28  }
  0x8f   :  { %v102_v29 = vpop.xlane.xlu1 %101  ;;  %v81_v30 = vpop.xlane.xlu0 %80 }
  0x90   :  { %v114_v31 = vadd.f32 %v111_v20, %v102_v29  ;;  %v93_v32 = vadd.f32 %v90_v19, %v81_v30 }
  0x92   :  { %v141_v33 = vmul.f32 0.01, %v114_v31  ;;  %v118_v34 = vmul.f32 0.01, %v93_v32  ;;  %vm139_vm3 = vcmp.ge.f32.partialorder %v114_v31, 0.0  ;;  %vm116_vm4 = vcmp.ge.f32.partialorder %v93_v32, 0.0 }
  0x94   :  { %v143_v35 = vsel %vm139_vm3, %v114_v31, %v141_v33  ;;  %v120_v36 = vsel %vm116_vm4, %v93_v32, %v118_v34 }
  0x95   :  { %150 = vperm.xlu2 %200, %v143_v35   ;;  %127 = vperm.xlu1 %199, %v120_v36  }
  0xe7   :  { %v148_v37 = vpop.permute.xlu2 %147 }
  0xe8   :  { %v152_v40 = vperm.slane %v148_v37, %v130_v38 }
  0xef   :  { %v151_v39 = vpop.permute.xlu2 %150 }
  0xf0   :  { %v153_v41 = vperm.slane %v151_v39, %v130_v38 }
  0xf2   :  { %v154_v42 = vsel %vm133_vm5, %v153_v41, %v152_v40 }
  0xf3   :  { %156 = vst.msk [vmem:[#allocation9] sm:$0x3] %vm136_vm6, %v154_v42 }
  0xf4   :  { %178 = dma.vmem_to_hbm [thread:$0]  %s174_s4, 32, %s176_s15, [#allocation10]  }
  0xff   :  { %v125_v43 = vpop.permute.xlu0 %124 }
 0x100   :  { %v131_v45 = vperm.slane %v125_v43, %v130_v38 }
 0x107   :  { %v128_v44 = vpop.permute.xlu1 %127 }
 0x108   :  { %v132_v46 = vperm.slane %v128_v44, %v130_v38 }
 0x10a   :  { %v134_v47 = vsel %vm133_vm5, %v132_v46, %v131_v45 }
 0x10b   :  { %137 = vst.msk [vmem:[#allocation8] sm:$0x3] %vm136_vm6, %v134_v47 }
 0x10c   :  { %167 = dma.vmem_to_hbm [thread:$0]  %s163_s17, 32, %s165_s20, [#allocation4]  }
 0x10d   :  { %327 = dma.done.wait [#allocation4], 32  }
 0x10e   :  { %328 = vsyncadd [#allocation4], 4294967264 }
 0x10f   :  { %329 = dma.done.wait [#allocation10], 32  }
 0x110   :  { %330 = vsyncadd [#allocation10], 4294967264 }
 0x111   :  { %187 = vsyncpa [#allocation3], 1 }
 0x112   :  { %188 = vsyncpa [#allocation6], 1 }
 0x113   :  { %189 = vsyncpa [#allocation4], 1 }
 0x114   :  { %190 = vsyncpa [#allocation10], 1 }

</bundles_post_ra>
